<compile_context>
chip_gen: v7x
topology: tpu7x:2x2x1
jax: 0.10.0
libtpu: 0.0.40
codegen_flags: <defaults>
</compile_context>

<pallas_src>
import functools

import jax
import jax.numpy as jnp
from jax.experimental import pallas as pl
from jax.experimental.pallas import tpu as pltpu


# ----------------------------------------------------------------------------
# Fused kernel: char CNN (conv k=5 pad=2 -> max over width -> relu)
#               -> fused word/char projection -> 2-layer highway.
# Grid: 1-D over rows (N = batch * text_len), tile = block_rows.
# ----------------------------------------------------------------------------
def _embedding_kernel(xw_ref, xc_ref, wconv_ref, bconv_ref, wproj_ref,
                      wh1_ref, bh1_ref, wh2_ref, bh2_ref, o_ref):
    # xw_ref:    (n, D)        word embeddings (matmul dtype, e.g. bf16)
    # xc_ref:    (n, W, C)     char embeddings (matmul dtype)
    # wconv_ref: (K*C, F)      conv weights, im2col layout
    # bconv_ref: (1, F)        conv bias (f32)
    # wproj_ref: (D+F, H)      [word_linear ; char_linear]
    # wh*_ref:   (H, 2H)       [gate | transform] weights
    # bh*_ref:   (1, 2H)       [gate | transform] biases (f32)
    # o_ref:     (n, H)        output (f32)
    n, W, C = xc_ref.shape
    KC, F = wconv_ref.shape
    K = KC // C
    H = o_ref.shape[-1]
    pad = (K - 1) // 2
    mm_dtype = wconv_ref.dtype

    # ---- char CNN: zero-pad the width axis in VMEM, im2col along lanes,
    #      single MXU pass (contraction K*C=80 instead of 5 passes of 16). ----
    xc = xc_ref[...].astype(jnp.float32)                       # (n, W, C)
    zpad = jnp.zeros((n, pad, C), jnp.float32)
    xp = jnp.concatenate([zpad, xc, zpad], axis=1)             # (n, W+K-1, C)
    taps = [xp[:, k:k + W, :] for k in range(K)]               # K x (n, W, C)
    xim = jnp.concatenate(taps, axis=-1).reshape(n * W, KC)    # (n*W, K*C)
    conv = jnp.dot(xim.astype(mm_dtype), wconv_ref[...],
                   preferred_element_type=jnp.float32)         # (n*W, F) f32
    conv = conv.reshape(n, W, F) + bconv_ref[...].reshape(1, 1, F)
    # torch: max over width, then relu (relu is monotone -> same result)
    yc = jnp.maximum(jnp.max(conv, axis=1), 0.0)               # (n, F) f32

    # ---- fused word/char projection: one (n, D+F) x (D+F, H) matmul ----
    xw = xw_ref[...].astype(jnp.float32)
    xcat = jnp.concatenate([xw, yc], axis=-1)                  # (n, D+F)
    h = jnp.dot(xcat.astype(mm_dtype), wproj_ref[...],
                preferred_element_type=jnp.float32)            # (n, H) f32

    # ---- 2-layer highway; gate|transform fused into one (H, 2H) matmul ----
    for wh_ref, bh_ref in ((wh1_ref, bh1_ref), (wh2_ref, bh2_ref)):
        z = jnp.dot(h.astype(mm_dtype), wh_ref[...],
                    preferred_element_type=jnp.float32) + bh_ref[...]
        g = jax.nn.sigmoid(z[:, :H])                           # gate
        t = jnp.maximum(z[:, H:], 0.0)                         # transform
        h = g * t + (1.0 - g) * h

    # TODO(synk): H=32 < 128 lanes -> masked output stores; a lane-dense
    # (n//4, 128) packed view would need a minor-dim reshape, left out for
    # lowering safety.
    o_ref[...] = h.astype(o_ref.dtype)


def _fused_embedding(x_word, x_char, weights, *, block_rows):
    n_pad, D = x_word.shape
    _, W, C = x_char.shape
    wconv, bconv, wproj, wh1, bh1, wh2, bh2 = weights
    H = wproj.shape[1]

    def whole(shape):
        # weights: full-array block, same block every grid step (stays in VMEM)
        return pl.BlockSpec(shape, lambda i: (0,) * len(shape))

    return pl.pallas_call(
        _embedding_kernel,
        out_shape=jax.ShapeDtypeStruct((n_pad, H), jnp.float32),
        grid=(n_pad // block_rows,),
        in_specs=[
            pl.BlockSpec((block_rows, D), lambda i: (i, 0)),
            pl.BlockSpec((block_rows, W, C), lambda i: (i, 0, 0)),
            whole(wconv.shape),
            whole(bconv.shape),
            whole(wproj.shape),
            whole(wh1.shape),
            whole(bh1.shape),
            whole(wh2.shape),
            whole(bh2.shape),
        ],
        out_specs=pl.BlockSpec((block_rows, H), lambda i: (i, 0)),
        compiler_params=pltpu.CompilerParams(
            dimension_semantics=("parallel",)),
    )(x_word, x_char, *weights)


# ----------------------------------------------------------------------------
# Full Embedding forward
# ----------------------------------------------------------------------------
@functools.partial(jax.jit, static_argnames=("block_rows", "matmul_dtype"))
def embedding_forward(text_word_ids, text_char_ids, params, *,
                      block_rows=256, matmul_dtype=jnp.bfloat16):
    B, T = text_word_ids.shape
    W = text_char_ids.shape[-1]
    K, C, F = params["conv_w"].shape
    D = params["word_vectors"].shape[1]
    H = params["word_linear"].shape[1]

    # ---- glue: embedding gathers (no hot compute; XLA gather) ----
    # TODO(synk): for production-size word tables, gather in-kernel via
    # PrefetchScalarGridSpec + pl.Element row blocks to avoid re-reading the
    # gathered activations from HBM.
    word_emb = jnp.take(params["word_vectors"], text_word_ids, axis=0)   # (B,T,D)
    char_emb = jnp.take(params["char_embed"], text_char_ids, axis=0)     # (B,T,W,C)

    N = B * T
    blk = min(block_rows, N)
    blk = max(8, (blk // 8) * 8)
    n_pad = -(-N // blk) * blk

    x_word = word_emb.reshape(N, D).astype(matmul_dtype)
    x_char = char_emb.reshape(N, W, C).astype(matmul_dtype)
    if n_pad != N:
        x_word = jnp.pad(x_word, ((0, n_pad - N), (0, 0)))
        x_char = jnp.pad(x_char, ((0, n_pad - N), (0, 0), (0, 0)))

    # fused / repacked weights (tiny; prepared once per call)
    weights = (
        params["conv_w"].reshape(K * C, F).astype(matmul_dtype),
        params["conv_b"].reshape(1, F).astype(jnp.float32),
        jnp.concatenate([params["word_linear"], params["char_linear"]],
                        axis=0).astype(matmul_dtype),
        jnp.concatenate([params["wg1"], params["wt1"]], axis=1).astype(matmul_dtype),
        jnp.concatenate([params["bg1"], params["bt1"]], axis=1).astype(jnp.float32),
        jnp.concatenate([params["wg2"], params["wt2"]], axis=1).astype(matmul_dtype),
        jnp.concatenate([params["bg2"], params["bt2"]], axis=1).astype(jnp.float32),
    )

    out = _fused_embedding(x_word, x_char, weights, block_rows=blk)   # (n_pad, H)
    return out[:N].reshape(B, T, H)


# ----------------------------------------------------------------------------
# Pure-JAX reference (follows the original module structure)
# ----------------------------------------------------------------------------
def embedding_forward_ref(text_word_ids, text_char_ids, params,
                          matmul_dtype=jnp.float32):
    def mm(a, b):
        return jnp.dot(a.astype(matmul_dtype), b.astype(matmul_dtype),
                       preferred_element_type=jnp.float32)

    B, T = text_word_ids.shape
    word_emb = jnp.take(params["word_vectors"], text_word_ids, axis=0)
    char_emb = jnp.take(params["char_embed"], text_char_ids, axis=0)
    N = B * T
    W, C = char_emb.shape[2], char_emb.shape[3]
    K, _, F = params["conv_w"].shape
    pad = (K - 1) // 2

    x = char_emb.reshape(N, W, C)
    x = jnp.pad(x, ((0, 0), (pad, pad), (0, 0)))
    acc = jnp.zeros((N, W, F), jnp.float32)
    for k in range(K):
        acc += mm(x[:, k:k + W, :].reshape(N * W, C),
                  params["conv_w"][k]).reshape(N, W, F)
    acc += params["conv_b"].reshape(1, 1, F)
    y = jnp.maximum(jnp.max(acc, axis=1), 0.0)

    h = mm(word_emb.reshape(N, -1), params["word_linear"]) \
        + mm(y, params["char_linear"])
    for i in ("1", "2"):
        g = jax.nn.sigmoid(mm(h, params["wg" + i]) + params["bg" + i])
        t = jnp.maximum(mm(h, params["wt" + i]) + params["bt" + i], 0.0)
        h = g * t + (1.0 - g) * h
    return h.reshape(B, T, -1)


# ----------------------------------------------------------------------------
# Deterministic parameter setup + driver
# ----------------------------------------------------------------------------
if __name__ == "__main__":
    # sizes (small, consistent with the module)
    B, T = 2, 8            # batch, text_len
    W = 16                 # max_word_len
    C = 16                 # char_embed_size
    F = 32                 # word_from_char_size
    D = 48                 # pre-trained word-vector dim
    H = 32                 # hidden_size
    WORD_VOCAB = 50
    CHAR_VOCAB = 1376
    K = 5                  # conv kernel size

    key = jax.random.PRNGKey(0)
    keys = jax.random.split(key, 16)

    # char embedding: normal init, rows 0 and 1 zeroed (padding idx behaviour)
    char_embed = jax.random.normal(keys[0], (CHAR_VOCAB, C), jnp.float32)
    char_embed = char_embed.at[0].set(0.0).at[1].set(0.0)

    params = {
        "word_vectors": jax.random.normal(keys[1], (WORD_VOCAB, D), jnp.float32),
        "char_embed": char_embed,
        # Conv1d weights stored as (K, C_in, C_out)
        "conv_w": 0.1 * jax.random.normal(keys[2], (K, C, F), jnp.float32),
        "conv_b": 0.1 * jax.random.normal(keys[3], (1, F), jnp.float32),
        # projections (xavier-ish scale)
        "word_linear": jax.random.normal(keys[4], (D, H), jnp.float32) * (2.0 / (D + H)) ** 0.5,
        "char_linear": jax.random.normal(keys[5], (F, H), jnp.float32) * (2.0 / (F + H)) ** 0.5,
        # highway layer 1
        "wg1": 0.1 * jax.random.normal(keys[6], (H, H), jnp.float32),
        "bg1": 0.1 * jax.random.normal(keys[7], (1, H), jnp.float32),
        "wt1": 0.1 * jax.random.normal(keys[8], (H, H), jnp.float32),
        "bt1": 0.1 * jax.random.normal(keys[9], (1, H), jnp.float32),
        # highway layer 2
        "wg2": 0.1 * jax.random.normal(keys[10], (H, H), jnp.float32),
        "bg2": 0.1 * jax.random.normal(keys[11], (1, H), jnp.float32),
        "wt2": 0.1 * jax.random.normal(keys[12], (H, H), jnp.float32),
        "bt2": 0.1 * jax.random.normal(keys[13], (1, H), jnp.float32),
    }

    text_word_ids = jax.random.randint(keys[14], (B, T), 0, WORD_VOCAB, jnp.int32)
    text_char_ids = jax.random.randint(keys[15], (B, T, W), 0, CHAR_VOCAB, jnp.int32)

    # small block_rows so the demo exercises a >1 grid (N = 16 -> grid (2,))
    out = embedding_forward(text_word_ids, text_char_ids, params, block_rows=8)
    out = jax.block_until_ready(out)
    assert out.shape == (B, T, H), out.shape

    # check against a reference using the same mixed precision policy (tight)
    ref_bf16 = embedding_forward_ref(text_word_ids, text_char_ids, params,
                                     matmul_dtype=jnp.bfloat16)
    err_bf16 = float(jnp.abs(out - ref_bf16).max())
    assert jnp.allclose(out, ref_bf16, atol=2e-2, rtol=2e-2), err_bf16

    # sanity check against the full-f32 module semantics (loose: bf16 matmuls)
    ref_f32 = embedding_forward_ref(text_word_ids, text_char_ids, params,
                                    matmul_dtype=jnp.float32)
    err_f32 = float(jnp.abs(out - ref_f32).max())
    assert jnp.allclose(out, ref_f32, atol=1e-1, rtol=1e-1), err_f32

    print("KERNEL_OK")
</pallas_src>

<mosaic_0001>
module attributes {stable_mosaic.version = 11 : i64} {
  func.func @_embedding_kernel(%arg0: i32, %arg1: memref<8x48xbf16, #tpu.memory_space<vmem>>, %arg2: memref<8x16x16xbf16, #tpu.memory_space<vmem>>, %arg3: memref<80x32xbf16, #tpu.memory_space<vmem>>, %arg4: memref<1x32xf32, #tpu.memory_space<vmem>>, %arg5: memref<80x32xbf16, #tpu.memory_space<vmem>>, %arg6: memref<32x64xbf16, #tpu.memory_space<vmem>>, %arg7: memref<1x64xf32, #tpu.memory_space<vmem>>, %arg8: memref<32x64xbf16, #tpu.memory_space<vmem>>, %arg9: memref<1x64xf32, #tpu.memory_space<vmem>>, %arg10: memref<8x32xf32, #tpu.memory_space<vmem>>) attributes {dimension_semantics = [#tpu.dimension_semantics<parallel>], iteration_bounds = array<i64: 2>, scalar_prefetch = 0 : i64, scratch_operands = 0 : i64, tpu.core_type = #tpu.core_type<tc>, window_params = [{transform_indices = @transform_0, window_bounds = array<i64: 8, 48>}, {transform_indices = @transform_1, window_bounds = array<i64: 8, 16, 16>}, {pipeline_mode = #tpu.pipeline_mode<synchronous>, transform_indices = @transform_2, window_bounds = array<i64: 80, 32>}, {pipeline_mode = #tpu.pipeline_mode<synchronous>, transform_indices = @transform_3, window_bounds = array<i64: 1, 32>}, {pipeline_mode = #tpu.pipeline_mode<synchronous>, transform_indices = @transform_4, window_bounds = array<i64: 80, 32>}, {pipeline_mode = #tpu.pipeline_mode<synchronous>, transform_indices = @transform_5, window_bounds = array<i64: 32, 64>}, {pipeline_mode = #tpu.pipeline_mode<synchronous>, transform_indices = @transform_6, window_bounds = array<i64: 1, 64>}, {pipeline_mode = #tpu.pipeline_mode<synchronous>, transform_indices = @transform_7, window_bounds = array<i64: 32, 64>}, {pipeline_mode = #tpu.pipeline_mode<synchronous>, transform_indices = @transform_8, window_bounds = array<i64: 1, 64>}, {transform_indices = @transform_9, window_bounds = array<i64: 8, 32>}]} {
    %c0 = arith.constant 0 : index
    %c0_0 = arith.constant 0 : index
    %c0_1 = arith.constant 0 : index
    %0 = vector.load %arg2[%c0, %c0_0, %c0_1] : memref<8x16x16xbf16, #tpu.memory_space<vmem>>, vector<8x16x16xbf16>
    %1 = arith.extf %0 : vector<8x16x16xbf16> to vector<8x16x16xf32>
    %cst = arith.constant 0.000000e+00 : f32
    %2 = vector.broadcast %cst : f32 to vector<8x2x16xf32>
    %3 = tpu.concatenate %2, %1, %2 in 1 : vector<8x2x16xf32>, vector<8x16x16xf32>, vector<8x2x16xf32> -> vector<8x20x16xf32>
    %4 = vector.extract_strided_slice %3 {offsets = [0, 0, 0], sizes = [8, 16, 16], strides = [1, 1, 1]} : vector<8x20x16xf32> to vector<8x16x16xf32>
    %5 = vector.extract_strided_slice %3 {offsets = [0, 1, 0], sizes = [8, 16, 16], strides = [1, 1, 1]} : vector<8x20x16xf32> to vector<8x16x16xf32>
    %6 = vector.extract_strided_slice %3 {offsets = [0, 2, 0], sizes = [8, 16, 16], strides = [1, 1, 1]} : vector<8x20x16xf32> to vector<8x16x16xf32>
    %7 = vector.extract_strided_slice %3 {offsets = [0, 3, 0], sizes = [8, 16, 16], strides = [1, 1, 1]} : vector<8x20x16xf32> to vector<8x16x16xf32>
    %8 = vector.extract_strided_slice %3 {offsets = [0, 4, 0], sizes = [8, 16, 16], strides = [1, 1, 1]} : vector<8x20x16xf32> to vector<8x16x16xf32>
    %9 = tpu.concatenate %4, %5, %6, %7, %8 in 2 : vector<8x16x16xf32>, vector<8x16x16xf32>, vector<8x16x16xf32>, vector<8x16x16xf32>, vector<8x16x16xf32> -> vector<8x16x80xf32>
    %10 = vector.shape_cast %9 : vector<8x16x80xf32> to vector<128x80xf32>
    %11 = arith.truncf %10 : vector<128x80xf32> to vector<128x80xbf16>
    %c0_2 = arith.constant 0 : index
    %c0_3 = arith.constant 0 : index
    %12 = vector.load %arg3[%c0_2, %c0_3] : memref<80x32xbf16, #tpu.memory_space<vmem>>, vector<80x32xbf16>
    %cst_4 = arith.constant dense<0.000000e+00> : vector<128x32xf32>
    %13 = tpu.matmul %11, %12, %cst_4 {dimension_numbers = #tpu.dot_dimension_numbers<[1], [0], [0], [1], [0, 0, 1, 1], [], []>} : vector<128x80xbf16>, vector<80x32xbf16>, vector<128x32xf32> -> vector<128x32xf32>
    %14 = vector.shape_cast %13 : vector<128x32xf32> to vector<8x16x32xf32>
    %c0_5 = arith.constant 0 : index
    %c0_6 = arith.constant 0 : index
    %15 = vector.load %arg4[%c0_5, %c0_6] : memref<1x32xf32, #tpu.memory_space<vmem>>, vector<1x32xf32>
    %16 = vector.shape_cast %15 : vector<1x32xf32> to vector<1x1x32xf32>
    %17 = vector.broadcast %16 : vector<1x1x32xf32> to vector<8x16x32xf32>
    %18 = arith.addf %14, %17 : vector<8x16x32xf32>
    %cst_7 = arith.constant dense<0xFF800000> : vector<8x32xf32>
    %19 = vector.multi_reduction <maximumf>, %18, %cst_7 [1] : vector<8x16x32xf32> to vector<8x32xf32>
    %cst_8 = arith.constant 0.000000e+00 : f32
    %20 = vector.broadcast %cst_8 : f32 to vector<8x32xf32>
    %21 = arith.maximumf %19, %20 : vector<8x32xf32>
    %c0_9 = arith.constant 0 : index
    %c0_10 = arith.constant 0 : index
    %22 = vector.load %arg1[%c0_9, %c0_10] : memref<8x48xbf16, #tpu.memory_space<vmem>>, vector<8x48xbf16>
    %23 = arith.extf %22 : vector<8x48xbf16> to vector<8x48xf32>
    %24 = tpu.concatenate %23, %21 in 1 : vector<8x48xf32>, vector<8x32xf32> -> vector<8x80xf32>
    %25 = arith.truncf %24 : vector<8x80xf32> to vector<8x80xbf16>
    %c0_11 = arith.constant 0 : index
    %c0_12 = arith.constant 0 : index
    %26 = vector.load %arg5[%c0_11, %c0_12] : memref<80x32xbf16, #tpu.memory_space<vmem>>, vector<80x32xbf16>
    %cst_13 = arith.constant dense<0.000000e+00> : vector<8x32xf32>
    %27 = tpu.matmul %25, %26, %cst_13 {dimension_numbers = #tpu.dot_dimension_numbers<[1], [0], [0], [1], [0, 0, 1, 1], [], []>} : vector<8x80xbf16>, vector<80x32xbf16>, vector<8x32xf32> -> vector<8x32xf32>
    %28 = arith.truncf %27 : vector<8x32xf32> to vector<8x32xbf16>
    %c0_14 = arith.constant 0 : index
    %c0_15 = arith.constant 0 : index
    %29 = vector.load %arg6[%c0_14, %c0_15] : memref<32x64xbf16, #tpu.memory_space<vmem>>, vector<32x64xbf16>
    %cst_16 = arith.constant dense<0.000000e+00> : vector<8x64xf32>
    %30 = tpu.matmul %28, %29, %cst_16 {dimension_numbers = #tpu.dot_dimension_numbers<[1], [0], [0], [1], [0, 0, 1, 1], [], []>} : vector<8x32xbf16>, vector<32x64xbf16>, vector<8x64xf32> -> vector<8x64xf32>
    %c0_17 = arith.constant 0 : index
    %c0_18 = arith.constant 0 : index
    %31 = vector.load %arg7[%c0_17, %c0_18] : memref<1x64xf32, #tpu.memory_space<vmem>>, vector<1x64xf32>
    %32 = vector.broadcast %31 : vector<1x64xf32> to vector<8x64xf32>
    %33 = arith.addf %30, %32 : vector<8x64xf32>
    %34 = vector.extract_strided_slice %33 {offsets = [0, 0], sizes = [8, 32], strides = [1, 1]} : vector<8x64xf32> to vector<8x32xf32>
    %35 = arith.negf %34 : vector<8x32xf32>
    %36 = math.exp %35 : vector<8x32xf32>
    %cst_19 = arith.constant 1.000000e+00 : f32
    %37 = vector.broadcast %cst_19 : f32 to vector<8x32xf32>
    %38 = arith.addf %37, %36 : vector<8x32xf32>
    %39 = arith.divf %37, %38 : vector<8x32xf32>
    %40 = vector.extract_strided_slice %33 {offsets = [0, 32], sizes = [8, 32], strides = [1, 1]} : vector<8x64xf32> to vector<8x32xf32>
    %cst_20 = arith.constant 0.000000e+00 : f32
    %41 = vector.broadcast %cst_20 : f32 to vector<8x32xf32>
    %42 = arith.maximumf %40, %41 : vector<8x32xf32>
    %43 = arith.mulf %39, %42 : vector<8x32xf32>
    %cst_21 = arith.constant 1.000000e+00 : f32
    %44 = vector.broadcast %cst_21 : f32 to vector<8x32xf32>
    %45 = arith.subf %44, %39 : vector<8x32xf32>
    %46 = arith.mulf %45, %27 : vector<8x32xf32>
    %47 = arith.addf %43, %46 : vector<8x32xf32>
    %48 = arith.truncf %47 : vector<8x32xf32> to vector<8x32xbf16>
    %c0_22 = arith.constant 0 : index
    %c0_23 = arith.constant 0 : index
    %49 = vector.load %arg8[%c0_22, %c0_23] : memref<32x64xbf16, #tpu.memory_space<vmem>>, vector<32x64xbf16>
    %cst_24 = arith.constant dense<0.000000e+00> : vector<8x64xf32>
    %50 = tpu.matmul %48, %49, %cst_24 {dimension_numbers = #tpu.dot_dimension_numbers<[1], [0], [0], [1], [0, 0, 1, 1], [], []>} : vector<8x32xbf16>, vector<32x64xbf16>, vector<8x64xf32> -> vector<8x64xf32>
    %c0_25 = arith.constant 0 : index
    %c0_26 = arith.constant 0 : index
    %51 = vector.load %arg9[%c0_25, %c0_26] : memref<1x64xf32, #tpu.memory_space<vmem>>, vector<1x64xf32>
    %52 = vector.broadcast %51 : vector<1x64xf32> to vector<8x64xf32>
    %53 = arith.addf %50, %52 : vector<8x64xf32>
    %54 = vector.extract_strided_slice %53 {offsets = [0, 0], sizes = [8, 32], strides = [1, 1]} : vector<8x64xf32> to vector<8x32xf32>
    %55 = arith.negf %54 : vector<8x32xf32>
    %56 = math.exp %55 : vector<8x32xf32>
    %cst_27 = arith.constant 1.000000e+00 : f32
    %57 = vector.broadcast %cst_27 : f32 to vector<8x32xf32>
    %58 = arith.addf %57, %56 : vector<8x32xf32>
    %59 = arith.divf %57, %58 : vector<8x32xf32>
    %60 = vector.extract_strided_slice %53 {offsets = [0, 32], sizes = [8, 32], strides = [1, 1]} : vector<8x64xf32> to vector<8x32xf32>
    %cst_28 = arith.constant 0.000000e+00 : f32
    %61 = vector.broadcast %cst_28 : f32 to vector<8x32xf32>
    %62 = arith.maximumf %60, %61 : vector<8x32xf32>
    %63 = arith.mulf %59, %62 : vector<8x32xf32>
    %cst_29 = arith.constant 1.000000e+00 : f32
    %64 = vector.broadcast %cst_29 : f32 to vector<8x32xf32>
    %65 = arith.subf %64, %59 : vector<8x32xf32>
    %66 = arith.mulf %65, %47 : vector<8x32xf32>
    %67 = arith.addf %63, %66 : vector<8x32xf32>
    %c0_30 = arith.constant 0 : index
    %c0_31 = arith.constant 0 : index
    %68 = vector.load %arg10[%c0_30, %c0_31] : memref<8x32xf32, #tpu.memory_space<vmem>>, vector<8x32xf32>
    tpu.vector_store %arg10[%c0_30, %c0_31], %67 {strides = array<i32>} : memref<8x32xf32, #tpu.memory_space<vmem>>, vector<8x32xf32>,
    return
  }
  func.func @transform_0(%arg0: i32) -> (i32, i32) {
    %c0_i32 = arith.constant 0 : i32
    %c0_i32_0 = arith.constant 0 : i32
    return %arg0, %c0_i32 : i32, i32
  }
  func.func @transform_1(%arg0: i32) -> (i32, i32, i32) {
    %c0_i32 = arith.constant 0 : i32
    %c0_i32_0 = arith.constant 0 : i32
    %c0_i32_1 = arith.constant 0 : i32
    return %arg0, %c0_i32, %c0_i32_0 : i32, i32, i32
  }
  func.func @transform_2(%arg0: i32) -> (i32, i32) {
    %c0_i32 = arith.constant 0 : i32
    %c0_i32_0 = arith.constant 0 : i32
    %c0_i32_1 = arith.constant 0 : i32
    return %c0_i32, %c0_i32_0 : i32, i32
  }
  func.func @transform_3(%arg0: i32) -> (i32, i32) {
    %c0_i32 = arith.constant 0 : i32
    %c0_i32_0 = arith.constant 0 : i32
    %c0_i32_1 = arith.constant 0 : i32
    return %c0_i32, %c0_i32_0 : i32, i32
  }
  func.func @transform_4(%arg0: i32) -> (i32, i32) {
    %c0_i32 = arith.constant 0 : i32
    %c0_i32_0 = arith.constant 0 : i32
    %c0_i32_1 = arith.constant 0 : i32
    return %c0_i32, %c0_i32_0 : i32, i32
  }
  func.func @transform_5(%arg0: i32) -> (i32, i32) {
    %c0_i32 = arith.constant 0 : i32
    %c0_i32_0 = arith.constant 0 : i32
    %c0_i32_1 = arith.constant 0 : i32
    return %c0_i32, %c0_i32_0 : i32, i32
  }
  func.func @transform_6(%arg0: i32) -> (i32, i32) {
    %c0_i32 = arith.constant 0 : i32
    %c0_i32_0 = arith.constant 0 : i32
    %c0_i32_1 = arith.constant 0 : i32
    return %c0_i32, %c0_i32_0 : i32, i32
  }
  func.func @transform_7(%arg0: i32) -> (i32, i32) {
    %c0_i32 = arith.constant 0 : i32
    %c0_i32_0 = arith.constant 0 : i32
    %c0_i32_1 = arith.constant 0 : i32
    return %c0_i32, %c0_i32_0 : i32, i32
  }
  func.func @transform_8(%arg0: i32) -> (i32, i32) {
    %c0_i32 = arith.constant 0 : i32
    %c0_i32_0 = arith.constant 0 : i32
    %c0_i32_1 = arith.constant 0 : i32
    return %c0_i32, %c0_i32_0 : i32, i32
  }
  func.func @transform_9(%arg0: i32) -> (i32, i32) {
    %c0_i32 = arith.constant 0 : i32
    %c0_i32_0 = arith.constant 0 : i32
    return %arg0, %c0_i32 : i32, i32
  }
}

</mosaic_0001>

<bundles_post_ra>
// kernel: embedding_forward.1
= control target key start
LH: loop header
LB: loop body
LE: loop exit
PB: predicated region body
PF: predicated region fallthrough
CT: control target
= control target key end

     0   :  { %14 = vsyncpa [#allocation3], 0  ;;  %s2612_s0 = inlined_call_operand.vmem [shape: bf16[16,48], index: 0, kind: input, shape index: {}]   ;;  %s2613_s1 = inlined_call_operand.vmem [shape: bf16[16,16,16], index: 1, kind: input, shape index: {}]   ;;  %s2614_s2 = inlined_call_operand.vmem [shape: bf16[80,32], index: 2, kind: input, shape index: {}]   ;;  %s2615_s3 = inlined_call_operand.vmem [shape: f32[1,32], index: 3, kind: input, shape index: {}]   ;;  %s2616_s4 = inlined_call_operand.vmem [shape: bf16[80,32], index: 4, kind: input, shape index: {}]   ;;  %s2617_s5 = inlined_call_operand.vmem [shape: bf16[32,64], index: 5, kind: input, shape index: {}]   ;;  %s2618_s6 = inlined_call_operand.vmem [shape: f32[1,64], index: 6, kind: input, shape index: {}]   ;;  %s2619_s7 = inlined_call_operand.vmem [shape: bf16[32,64], index: 7, kind: input, shape index: {}]   ;;  %s2620_s8 = inlined_call_operand.vmem [shape: f32[1,64], index: 8, kind: input, shape index: {}]   ;;  %s2621_s9 = inlined_call_operand.hbm [shape: f32[16,32], index: 9, kind: output, shape index: {}]  }
   0x1   :  { %16 = vsyncpa [#allocation3 + $0x1], 0  ;;  %s2056_s30 = smov 0   ;;  %s2058_s10 = smov 0  }
   0x2   :  { %s2060_s11 = smov 0   ;;  %s2062_s12 = smov 0  }
   0x3 LB: > { %s2077_s13 = sadd.s32 4294967295, %s1996_s12   ;;  %s1542_s14 = sadd.s32 4294967294, %s1996_s12   ;;  %s1996_s12 = sphi %s2062_s12, %s2627_s12   ;;  %s1992_s11 = sphi %s2060_s11, %s2626_s11   ;;  %s1988_s10 = sphi %s2058_s10, %s2625_s10   ;;  %s1984_s30 = sphi %s2056_s30, %s2624_s30  }
   0x4   : > { %s2081_s15 = sadd.s32 1, %s1996_s12   ;;  %s228_s16 = sadd.s32 1, %s1992_s11 }
   0x5   : > { %s225_s17 = ssub.s32 %s1996_s12, %s2081_s15  ;;  %p238_p0 = scmp.ne.s32.totalorder %s1992_s11, %s1988_s10 }
   0x6   : > { %p226_p1 = scmp.eq.s32.totalorder %s225_s17, 0  ;;  %p239_p2 = scmp.eq.s32.totalorder %s2077_s13, 1 }
   0x7   : > { %p244_p3 = scmp.ne.s32.totalorder %s1988_s10, %s1984_s30  ;;  %p245_p4 = scmp.eq.s32.totalorder %s1542_s14, 1 }
   0x8   : > { %s2092_s18 = scalar_select %p226_p1, %s1992_s11, %s228_s16  }
   0x9   : > { %p2094_p5 = por %p239_p2, %p238_p0  ;;  %p2098_p6 = por %p245_p4, %p244_p3 }
   0xa   : > { %p1545_p7 = scmp.ge.s32.totalorder %s1996_s12, 1  ;;  %p301_p8 = scmp.lt.s32.totalorder %s1996_s12, 3 }
   0xc   : > { %p302_p9 = pnand %p1545_p7, %p301_p8 }
   0xd   : > { %s1548_s21 = sshll.u32 (!%p302_p9), %s2077_s13, 3  ;;  %v1912_v0 = vld [vmem:[%s2614_s2] sm:$0xff] (!%p302_p9)   ;;  %v1913_v1 = vld [vmem:[%s2614_s2 + $0x8] sm:$0xff] (!%p302_p9)   ;;  %vm402_vm0 = vcmask (!%p302_p9), 1041408   ;;  %vm572_vm1 = vcmask (!%p302_p9), 1045504   ;;  %vm483_vm2 = vcmask (!%p302_p9), 1046528  }
   0xe   : > { %305 = sbr.rel (%p302_p9) target bundleno = 1471 (0x5bf), region = 56  ;;  %p347_p10 = scmp.lt.s32.totalorder (!%p302_p9), %s1548_s21, 15  ;;  %1650 = vmatprep.subr.bf16.mxu0 (!%p302_p9), %v1912_v0  ;;  %vm661_vm3 = vcmask (!%p302_p9), 1044480   ;;  %v1914_v18 = vld [vmem:[%s2614_s2 + $0x10] sm:$0xff] (!%p302_p9)   ;;  %vm750_vm4 = vcmask (!%p302_p9), 1043456   ;;  %v1915_v35 = vld [vmem:[%s2614_s2 + $0x18] sm:$0xff] (!%p302_p9)  }
   0xf   : > { %1651 = vmatpush3.bf16.msra.mxu0 (!%p302_p9), %v1912_v0  ;;  %s1998_s22 = smov (!%p302_p9), 32   ;;  %v1916_v52 = vld [vmem:[%s2614_s2 + $0x20] sm:$0xff] (!%p302_p9)   ;;  %s1999_s25 = smov (!%p302_p9), 16   ;;  %vm839_vm5 = vcmask (!%p302_p9), 130048   ;;  %vm856_vm6 = vcmask (!%p302_p9), 261120   ;;  %vm873_vm7 = vcmask (!%p302_p9), 392192  }
  0x10   : > { %1652 = vmatprep.subr.bf16.mxu0 (!%p302_p9), %v1913_v1  ;;  %s2000_s26 = smov (!%p302_p9), 48   ;;  %s2001_s28 = smov (!%p302_p9), 64   ;;  %vm890_vm8 = vcmask (!%p302_p9), 523264   ;;  %vm955_vm9 = vcmask (!%p302_p9), 654336   ;;  %vm1190_vm10 = vcmask (!%p302_p9), 1041409   ;;  %vm1192_vm11 = vcmask (!%p302_p9), 1042434  }
  0x11   : > { %vm1194_vm12 = vcmask (!%p302_p9), 1043459   ;;  %vm1196_vm13 = vcmask (!%p302_p9), 1044484   ;;  %vm1198_vm14 = vcmask (!%p302_p9), 1045509   ;;  %vm2003_vm15 = vmmov (!%p302_p9), 0   ;;  %p342_p11 = scmp.lt.s32.totalorder (!%p302_p9), %s2077_s13, 1  ;;  %s2004_s17 = smov (!%p302_p9), 96  }
  0x12   : > { %s339_s23 = sand.u32 (!%p302_p9), 1, %s1988_s10  }
  0x13   : > { %1653 = vmatpush3.bf16.msra.mxu0 (!%p302_p9), %v1913_v1  ;;  %s1458_s16 = scalar_lea.sflag (!%p302_p9), [#allocation3], %s339_s23 }
  0x14   : > { %1654 = vmatprep.subr.bf16.mxu0 (!%p302_p9), %v1914_v18 }
  0x15   : > { %s2629_s21 = smov (!%p347_p10, %s1548_s21), 15 }
  0x16   : > { %s1585_s24 = sshll.u32 %s2629_s21, 3 }
  0x17   : > { %s2111_s27 = scalar_lea.vmem %s2613_s1, %s1585_s24  ;;  %1655 = vmatpush3.bf16.msra.mxu0 %v1914_v18  ;;  %s1582_s24 = sshll.u32 %s2077_s13, 7 }
  0x18   : > { %v1587_v2 = vld [vmem:[%s2111_s27] sm:$0xff]   ;;  %v1618_v3 = vld [vmem:[%s2111_s27 + $0x8] sm:$0xff]   ;;  %v1620_v4 = vld [vmem:[%s2111_s27 + $0x18] sm:$0xff]   ;;  %1656 = vmatprep.subr.bf16.mxu0 %v1915_v35  ;;  %s343_s29 = scalar_select %p342_p11, %s2077_s13, 1 }
  0x19   : > { %v1588_v5 = vunpack.c.l.bf16 %v1587_v2  ;;  %v1589_v6 = vunpack.c.h.bf16 %v1587_v2  ;;  %v1592_v7 = vunpack.c.l.bf16 %v1618_v3  ;;  %v1593_v8 = vunpack.c.h.bf16 %v1618_v3  ;;  %v1619_v9 = vld [vmem:[%s2111_s27 + $0x10] sm:$0xff]   ;;  %s2005_s13 = smov [#allocation2]  }
  0x1a   : > { %v1600_v10 = vunpack.c.l.bf16 %v1620_v4  ;;  %v1601_v11 = vunpack.c.h.bf16 %v1620_v4  ;;  %v1596_v12 = vunpack.c.l.bf16 %v1619_v9  ;;  %v1597_v13 = vunpack.c.h.bf16 %v1619_v9  ;;  %s1547_s14 = sshll.u32 %s343_s29, 2 }
  0x1b   : > { %v403_v14 = vrot.slane %v1588_v5, 6  ;;  %v404_v15 = vrot.slane %v1589_v6, 6  ;;  %v406_v16 = vrot.slane %v1592_v7, 6  ;;  %v407_v17 = vrot.slane %v1593_v8, 6  ;;  %1657 = vmatpush3.bf16.msra.mxu0 %v1915_v35  ;;  %s345_s21 = scalar_lea.vmem %s2612_s0, %s1547_s14  ;;  %s2569_s14 = scalar_lea.hbm %s2621_s9, %s1582_s24 }
  0x1c   : > { %v2123_v19 = vrot.slane %v1600_v10, 6  ;;  %v2125_v20 = vrot.slane %v1601_v11, 6  ;;  %v2127_v21 = vrot.slane %v1596_v12, 6  ;;  %v2129_v22 = vrot.slane %v1597_v13, 6  ;;  %1658 = vmatprep.subr.bf16.mxu0 %v1916_v52 }
  0x1d   : > { %v2132_v23 = vsel %vm402_vm0, %v403_v14, %v404_v15  ;;  %v2135_v24 = vsel %vm402_vm0, 0.0, %v403_v14  ;;  %v2138_v25 = vsel %vm402_vm0, %v404_v15, 0.0  ;;  %v2141_v26 = vsel %vm402_vm0, %v406_v16, %v407_v17 }
  0x1e   : > { %v573_v27 = vrot.slane %v2135_v24, 2  ;;  %v574_v28 = vrot.slane %v2132_v23, 2  ;;  %v576_v29 = vrot.slane %v2138_v25, 2  ;;  %v484_v30 = vrot.slane %v2135_v24, 1 }
  0x1f   : > { %v485_v31 = vrot.slane %v2132_v23, 1  ;;  %v487_v32 = vrot.slane %v2138_v25, 1  ;;  %v2150_v33 = vsel %vm402_vm0, 0.0, %v406_v16  ;;  %v460_v34 = vsel %vm402_vm0, %v407_v17, 0.0  ;;  %1659 = vmatpush3.bf16.msra.mxu0 %v1916_v52 }
  0x20   : > { %v575_v36 = vsel %vm572_vm1, %v573_v27, %v574_v28  ;;  %v577_v37 = vsel %vm572_vm1, %v574_v28, %v576_v29  ;;  %v578_v38 = vrot.slane %v2150_v33, 2  ;;  %v579_v39 = vrot.slane %v2141_v26, 2 }
  0x21   : > { %v1762_v40 = vpack.i.bf16 %v577_v37, %v575_v36  ;;  %v486_v41 = vsel %vm483_vm2, %v484_v30, %v485_v31  ;;  %v488_v42 = vsel %vm483_vm2, %v485_v31, %v487_v32  ;;  %v581_v43 = vrot.slane %v460_v34, 2 }
  0x22   : > { %v1752_v44 = vpack.i.bf16 %v488_v42, %v486_v41  ;;  %v580_v45 = vsel %vm572_vm1, %v578_v38, %v579_v39  ;;  %v489_v46 = vrot.slane %v2150_v33, 1  ;;  %v490_v47 = vrot.slane %v2141_v26, 1 }
  0x23   : > { %1763 = vrot.lane.b32.xlu1 %v1762_v40, %s1998_s22  ;;  %v582_v48 = vsel %vm572_vm1, %v579_v39, %v581_v43  ;;  %v492_v49 = vrot.slane %v460_v34, 1  ;;  %v667_v50 = vrot.slane %v2150_v33, 3  ;;  %v668_v51 = vrot.slane %v2141_v26, 3 }
  0x24   : > { %1753 = vrot.lane.b32.xlu0 %v1752_v44, %s1999_s25  ;;  %v1767_v53 = vpack.i.bf16 %v582_v48, %v580_v45  ;;  %v491_v54 = vsel %vm483_vm2, %v489_v46, %v490_v47  ;;  %v670_v55 = vrot.slane %v460_v34, 3  ;;  %v662_v56 = vrot.slane %v2135_v24, 3 }
  0x25   : > { %v493_v57 = vsel %vm483_vm2, %v490_v47, %v492_v49  ;;  %v669_v58 = vsel %vm661_vm3, %v667_v50, %v668_v51  ;;  %v663_v59 = vrot.slane %v2132_v23, 3  ;;  %v665_v60 = vrot.slane %v2138_v25, 3 }
  0x26   : > { %v1757_v61 = vpack.i.bf16 %v493_v57, %v491_v54  ;;  %v671_v62 = vsel %vm661_vm3, %v668_v51, %v670_v55  ;;  %v756_v63 = vrot.slane %v2150_v33, 4  ;;  %v757_v0 = vrot.slane %v2141_v26, 4 }
  0x27   : > { %1768 = vrot.lane.b32.xlu1 %v1767_v53, %s1998_s22  ;;  %v1777_v1 = vpack.i.bf16 %v671_v62, %v669_v58  ;;  %v664_v2 = vsel %vm661_vm3, %v662_v56, %v663_v59  ;;  %v666_v3 = vsel %vm661_vm3, %v663_v59, %v665_v60  ;;  %v759_v4 = vrot.slane %v460_v34, 4 }
  0x28   : > { %1758 = vrot.lane.b32.xlu0 %v1757_v61, %s1999_s25  ;;  %v1772_v5 = vpack.i.bf16 %v666_v3, %v664_v2  ;;  %v758_v6 = vsel %vm750_vm4, %v756_v63, %v757_v0  ;;  %v751_v7 = vrot.slane %v2135_v24, 4  ;;  %v752_v8 = vrot.slane %v2132_v23, 4  ;;  %v1622_v61 = vld [vmem:[%s2111_s27 + $0x28] sm:$0xff]   ;;  %v1624_v2 = vld [vmem:[%s2111_s27 + $0x38] sm:$0xff]  }
  0x29   : > { %v760_v9 = vsel %vm750_vm4, %v757_v0, %v759_v4  ;;  %v754_v10 = vrot.slane %v2138_v25, 4  ;;  %v2194_v11 = vsel %vm402_vm0, %v2123_v19, %v2125_v20  ;;  %v2198_v12 = vsel %vm402_vm0, 0.0, %v2123_v19 }
  0x2a   : > { %v1787_v13 = vpack.i.bf16 %v760_v9, %v758_v6  ;;  %v753_v14 = vsel %vm750_vm4, %v751_v7, %v752_v8  ;;  %v462_v15 = vsel %vm402_vm0, %v2125_v20, 0.0  ;;  %v499_v16 = vrot.slane %v2198_v12, 1 }
  0x2b   : > { %1778 = vrot.lane.b32.xlu1 %v1777_v1, %s2000_s26  ;;  %v755_v17 = vsel %vm750_vm4, %v752_v8, %v754_v10  ;;  %v500_v18 = vrot.slane %v2194_v11, 1  ;;  %v502_v25 = vrot.slane %v462_v15, 1  ;;  %v2210_v19 = vsel %vm402_vm0, %v2127_v21, %v2129_v22  ;;  %v1621_v1 = vld [vmem:[%s2111_s27 + $0x20] sm:$0xff]  }
  0x2c   : > { %1773 = vrot.lane.b32.xlu0 %v1772_v5, %s2000_s26  ;;  %v1782_v27 = vpack.i.bf16 %v755_v17, %v753_v14  ;;  %v2215_v20 = vsel %vm402_vm0, 0.0, %v2127_v21  ;;  %v461_v28 = vsel %vm402_vm0, %v2129_v22, 0.0  ;;  %v495_v29 = vrot.slane %v2210_v19, 1 }
  0x2d   : > { %v501_v30 = vsel %vm483_vm2, %v499_v16, %v500_v18  ;;  %v503_v31 = vsel %vm483_vm2, %v500_v18, %v502_v25  ;;  %v494_v32 = vrot.slane %v2215_v20, 1  ;;  %v497_v34 = vrot.slane %v461_v28, 1 }
  0x2e   : > { %v1797_v35 = vpack.i.bf16 %v503_v31, %v501_v30  ;;  %v588_v36 = vrot.slane %v2198_v12, 2  ;;  %v589_v37 = vrot.slane %v2194_v11, 2  ;;  %v591_v38 = vrot.slane %v462_v15, 2 }
  0x2f   : > { %1788 = vrot.lane.b32.xlu1 %v1787_v13, %s2001_s28  ;;  %v496_v21 = vsel %vm483_vm2, %v494_v32, %v495_v29  ;;  %v498_v22 = vsel %vm483_vm2, %v495_v29, %v497_v34  ;;  %v583_v39 = vrot.slane %v2215_v20, 2  ;;  %v584_v40 = vrot.slane %v2210_v19, 2 }
  0x30   : > { %1783 = vrot.lane.b32.xlu0 %v1782_v27, %s2001_s28  ;;  %v1792_v41 = vpack.i.bf16 %v498_v22, %v496_v21  ;;  %v590_v42 = vsel %vm572_vm1, %v588_v36, %v589_v37  ;;  %v592_v43 = vsel %vm572_vm1, %v589_v37, %v591_v38  ;;  %v586_v44 = vrot.slane %v461_v28, 2 }
  0x31   : > { %v1807_v45 = vpack.i.bf16 %v592_v43, %v590_v42  ;;  %v585_v46 = vsel %vm572_vm1, %v583_v39, %v584_v40  ;;  %v677_v47 = vrot.slane %v2198_v12, 3  ;;  %v678_v48 = vrot.slane %v2194_v11, 3 }
  0x32   : > { %v587_v49 = vsel %vm572_vm1, %v584_v40, %v586_v44  ;;  %v680_v50 = vrot.slane %v462_v15, 3  ;;  %v672_v51 = vrot.slane %v2215_v20, 3  ;;  %v673_v52 = vrot.slane %v2210_v19, 3 }
  0x33   : > { %1798 = vrot.lane.b32.xlu1 %v1797_v35, %s1999_s25  ;;  %v1802_v53 = vpack.i.bf16 %v587_v49, %v585_v46  ;;  %v679_v54 = vsel %vm661_vm3, %v677_v47, %v678_v48  ;;  %v675_v55 = vrot.slane %v461_v28, 3  ;;  %v766_v56 = vrot.slane %v2198_v12, 4 }
  0x34   : > { %1793 = vrot.lane.b32.xlu0 %v1792_v41, %s1999_s25  ;;  %v681_v57 = vsel %vm661_vm3, %v678_v48, %v680_v50  ;;  %v674_v58 = vsel %vm661_vm3, %v672_v51, %v673_v52  ;;  %v767_v59 = vrot.slane %v2194_v11, 4  ;;  %v769_v60 = vrot.slane %v462_v15, 4 }
  0x35   : > { %v676_v62 = vsel %vm661_vm3, %v673_v52, %v675_v55  ;;  %v761_v63 = vrot.slane %v2215_v20, 4  ;;  %v762_v0 = vrot.slane %v2210_v19, 4  ;;  %v1817_v3 = vpack.i.bf16 %v681_v57, %v679_v54 }
  0x36   : > { %v768_v4 = vsel %vm750_vm4, %v766_v56, %v767_v59  ;;  %v770_v5 = vsel %vm750_vm4, %v767_v59, %v769_v60  ;;  %v764_v6 = vrot.slane %v461_v28, 4  ;;  %v1812_v7 = vpack.i.bf16 %v676_v62, %v674_v58 }
  0x37   : > { %1808 = vrot.lane.b32.xlu1 %v1807_v45, %s1998_s22  ;;  %v763_v8 = vsel %vm750_vm4, %v761_v63, %v762_v0  ;;  %v1608_v9 = vunpack.c.l.bf16 %v1622_v61  ;;  %v1609_v10 = vunpack.c.h.bf16 %v1622_v61  ;;  %v1604_v14 = vunpack.c.l.bf16 %v1621_v1 }
  0x38   : > { %1803 = vrot.lane.b32.xlu0 %v1802_v53, %s1998_s22  ;;  %v765_v13 = vsel %vm750_vm4, %v762_v0, %v764_v6  ;;  %v1605_v15 = vunpack.c.h.bf16 %v1621_v1  ;;  %v1616_v16 = vunpack.c.l.bf16 %v1624_v2  ;;  %v1827_v17 = vpack.i.bf16 %v770_v5, %v768_v4 }
  0x39   : > { %v418_v18 = vrot.slane %v1608_v9, 6  ;;  %v419_v25 = vrot.slane %v1609_v10, 6  ;;  %v1617_v27 = vunpack.c.h.bf16 %v1624_v2  ;;  %v1822_v29 = vpack.i.bf16 %v765_v13, %v763_v8 }
  0x3a   : > { %v415_v28 = vrot.slane %v1604_v14, 6  ;;  %v416_v30 = vrot.slane %v1605_v15, 6  ;;  %v2258_v31 = vrot.slane %v1616_v16, 6 }
  0x3b   : > { %1818 = vrot.lane.b32.xlu1 %v1817_v3, %s2000_s26  ;;  %v2262_v32 = vsel %vm402_vm0, %v418_v18, %v419_v25  ;;  %v2265_v34 = vsel %vm402_vm0, 0.0, %v418_v18  ;;  %v464_v35 = vsel %vm402_vm0, %v419_v25, 0.0  ;;  %v425_v36 = vrot.slane %v1617_v27, 6  ;;  %v1623_v3 = vld [vmem:[%s2111_s27 + $0x30] sm:$0xff]  }
  0x3c   : > { %1813 = vrot.lane.b32.xlu0 %v1812_v7, %s2000_s26  ;;  %v509_v37 = vrot.slane %v2265_v34, 1  ;;  %v510_v38 = vrot.slane %v2262_v32, 1  ;;  %v512_v21 = vrot.slane %v464_v35, 1  ;;  %v2272_v22 = vsel %vm402_vm0, %v415_v28, %v416_v30 }
  0x3d   : > { %v2275_v39 = vsel %vm402_vm0, 0.0, %v415_v28  ;;  %v463_v40 = vsel %vm402_vm0, %v416_v30, 0.0  ;;  %v505_v41 = vrot.slane %v2272_v22, 1  ;;  %v598_v42 = vrot.slane %v2265_v34, 2 }
  0x3e   : > { %v511_v43 = vsel %vm483_vm2, %v509_v37, %v510_v38  ;;  %v513_v44 = vsel %vm483_vm2, %v510_v38, %v512_v21  ;;  %v504_v45 = vrot.slane %v2275_v39, 1  ;;  %v507_v46 = vrot.slane %v463_v40, 1 }
  0x3f   : > { %1828 = vrot.lane.b32.xlu1 %v1827_v17, %s2001_s28  ;;  %v1837_v47 = vpack.i.bf16 %v513_v44, %v511_v43  ;;  %v599_v48 = vrot.slane %v2262_v32, 2  ;;  %v601_v49 = vrot.slane %v464_v35, 2  ;;  %v593_v50 = vrot.slane %v2275_v39, 2 }
  0x40   : > { %1823 = vrot.lane.b32.xlu0 %v1822_v29, %s2001_s28  ;;  %v506_v51 = vsel %vm483_vm2, %v504_v45, %v505_v41  ;;  %v508_v52 = vsel %vm483_vm2, %v505_v41, %v507_v46  ;;  %v594_v53 = vrot.slane %v2272_v22, 2  ;;  %v596_v54 = vrot.slane %v463_v40, 2 }
  0x41   : > { %v1832_v55 = vpack.i.bf16 %v508_v52, %v506_v51  ;;  %v600_v56 = vsel %vm572_vm1, %v598_v42, %v599_v48  ;;  %v602_v57 = vsel %vm572_vm1, %v599_v48, %v601_v49  ;;  %v687_v58 = vrot.slane %v2265_v34, 3 }
  0x42   : > { %v1847_v59 = vpack.i.bf16 %v602_v57, %v600_v56  ;;  %v595_v60 = vsel %vm572_vm1, %v593_v50, %v594_v53  ;;  %v597_v61 = vsel %vm572_vm1, %v594_v53, %v596_v54  ;;  %v688_v62 = vrot.slane %v2262_v32, 3 }
  0x43   : > { %1838 = vrot.lane.b32.xlu1 %v1837_v47, %s1999_s25  ;;  %v1842_v63 = vpack.i.bf16 %v597_v61, %v595_v60  ;;  %v690_v0 = vrot.slane %v464_v35, 3  ;;  %v682_v1 = vrot.slane %v2275_v39, 3  ;;  %v683_v2 = vrot.slane %v2272_v22, 3 }
  0x44   : > { %1833 = vrot.lane.b32.xlu0 %v1832_v55, %s1999_s25  ;;  %v689_v4 = vsel %vm661_vm3, %v687_v58, %v688_v62  ;;  %v685_v5 = vrot.slane %v463_v40, 3  ;;  %v776_v6 = vrot.slane %v2265_v34, 4  ;;  %v777_v7 = vrot.slane %v2262_v32, 4 }
  0x45   : > { %v691_v8 = vsel %vm661_vm3, %v688_v62, %v690_v0  ;;  %v684_v9 = vsel %vm661_vm3, %v682_v1, %v683_v2  ;;  %v779_v10 = vrot.slane %v464_v35, 4  ;;  %v771_v13 = vrot.slane %v2275_v39, 4 }
  0x46   : > { %v1857_v14 = vpack.i.bf16 %v691_v8, %v689_v4  ;;  %v686_v15 = vsel %vm661_vm3, %v683_v2, %v685_v5  ;;  %v772_v16 = vrot.slane %v2272_v22, 4  ;;  %v1612_v17 = vunpack.c.l.bf16 %v1623_v3 }
  0x47   : > { %1848 = vrot.lane.b32.xlu1 %v1847_v59, %s1998_s22  ;;  %v778_v18 = vsel %vm750_vm4, %v776_v6, %v777_v7  ;;  %v780_v25 = vsel %vm750_vm4, %v777_v7, %v779_v10  ;;  %v774_v27 = vrot.slane %v463_v40, 4  ;;  %v2314_v29 = vsel %vm402_vm0, %v2258_v31, %v425_v36 }
  0x48   : > { %1843 = vrot.lane.b32.xlu0 %v1842_v63, %s1998_s22  ;;  %v1852_v28 = vpack.i.bf16 %v686_v15, %v684_v9  ;;  %v773_v30 = vsel %vm750_vm4, %v771_v13, %v772_v16  ;;  %v2320_v35 = vsel %vm402_vm0, 0.0, %v2258_v31  ;;  %v2323_v37 = vsel %vm402_vm0, %v425_v36, 0.0 }
  0x49   : > { %v775_v38 = vsel %vm750_vm4, %v772_v16, %v774_v27  ;;  %v519_v21 = vrot.slane %v2320_v35, 1  ;;  %v520_v40 = vrot.slane %v2314_v29, 1  ;;  %v522_v41 = vrot.slane %v2323_v37, 1 }
  0x4a   : > { %v1867_v42 = vpack.i.bf16 %v780_v25, %v778_v18  ;;  %v1613_v43 = vunpack.c.h.bf16 %v1623_v3  ;;  %v421_v44 = vrot.slane %v1612_v17, 6  ;;  %v608_v45 = vrot.slane %v2320_v35, 2 }
  0x4b   : > { %1858 = vrot.lane.b32.xlu1 %v1857_v14, %s2000_s26  ;;  %v521_v31 = vsel %vm483_vm2, %v519_v21, %v520_v40  ;;  %v523_v36 = vsel %vm483_vm2, %v520_v40, %v522_v41  ;;  %v609_v46 = vrot.slane %v2314_v29, 2  ;;  %v611_v47 = vrot.slane %v2323_v37, 2 }
  0x4c   : > { %1853 = vrot.lane.b32.xlu0 %v1852_v28, %s2000_s26  ;;  %v1862_v48 = vpack.i.bf16 %v775_v38, %v773_v30  ;;  %v1877_v49 = vpack.i.bf16 %v523_v36, %v521_v31  ;;  %v422_v50 = vrot.slane %v1613_v43, 6  ;;  %v2337_v51 = vsel %vm402_vm0, 0.0, %v421_v44 }
  0x4d   : > { %v514_v52 = vrot.slane %v2337_v51, 1  ;;  %v610_v53 = vsel %vm572_vm1, %v608_v45, %v609_v46  ;;  %v603_v54 = vrot.slane %v2337_v51, 2  ;;  %v697_v55 = vrot.slane %v2320_v35, 3 }
  0x4e   : > { %v2344_v56 = vsel %vm402_vm0, %v421_v44, %v422_v50  ;;  %v465_v57 = vsel %vm402_vm0, %v422_v50, 0.0  ;;  %v612_v58 = vsel %vm572_vm1, %v609_v46, %v611_v47  ;;  %v698_v59 = vrot.slane %v2314_v29, 3 }
  0x4f   : > { %1868 = vrot.lane.b32.xlu1 %v1867_v42, %s2001_s28  ;;  %v515_v60 = vrot.slane %v2344_v56, 1  ;;  %v517_v61 = vrot.slane %v465_v57, 1  ;;  %v604_v62 = vrot.slane %v2344_v56, 2  ;;  %v606_v63 = vrot.slane %v465_v57, 2 }
  0x50   : > { %1863 = vrot.lane.b32.xlu0 %v1862_v48, %s2001_s28  ;;  %v700_v0 = vrot.slane %v2323_v37, 3  ;;  %v692_v1 = vrot.slane %v2337_v51, 3  ;;  %v693_v2 = vrot.slane %v2344_v56, 3  ;;  %v1887_v8 = vpack.i.bf16 %v612_v58, %v610_v53 }
  0x51   : > { %v516_v3 = vsel %vm483_vm2, %v514_v52, %v515_v60  ;;  %v518_v4 = vsel %vm483_vm2, %v515_v60, %v517_v61  ;;  %v605_v5 = vsel %vm572_vm1, %v603_v54, %v604_v62  ;;  %v607_v6 = vsel %vm572_vm1, %v604_v62, %v606_v63 }
  0x52   : > { %v1872_v7 = vpack.i.bf16 %v518_v4, %v516_v3  ;;  %v1882_v9 = vpack.i.bf16 %v607_v6, %v605_v5  ;;  %v699_v10 = vsel %vm661_vm3, %v697_v55, %v698_v59  ;;  %v701_v13 = vsel %vm661_vm3, %v698_v59, %v700_v0 }
  0x53   : > { %1878 = vrot.lane.b32.xlu1 %v1877_v49, %s1999_s25  ;;  %v695_v14 = vrot.slane %v465_v57, 3  ;;  %v694_v15 = vsel %vm661_vm3, %v692_v1, %v693_v2  ;;  %v786_v16 = vrot.slane %v2320_v35, 4  ;;  %v787_v17 = vrot.slane %v2314_v29, 4 }
  0x54   : > { %1873 = vrot.lane.b32.xlu0 %v1872_v7, %s1999_s25  ;;  %v789_v18 = vrot.slane %v2323_v37, 4  ;;  %v781_v27 = vrot.slane %v2337_v51, 4  ;;  %v782_v28 = vrot.slane %v2344_v56, 4  ;;  %v784_v30 = vrot.slane %v465_v57, 4 }
  0x55   : > { %v696_v25 = vsel %vm661_vm3, %v693_v2, %v695_v14  ;;  %v1897_v38 = vpack.i.bf16 %v701_v13, %v699_v10  ;;  %v788_v40 = vsel %vm750_vm4, %v786_v16, %v787_v17  ;;  %vm1200_vm0 = vcmask 1046534  }
  0x56   : > { %v1892_v21 = vpack.i.bf16 %v696_v25, %v694_v15  ;;  %v790_v41 = vsel %vm750_vm4, %v787_v17, %v789_v18  ;;  %v783_v42 = vsel %vm750_vm4, %v781_v27, %v782_v28  ;;  %v785_v37 = vsel %vm750_vm4, %v782_v28, %v784_v30 }
  0x57   : > { %1888 = vrot.lane.b32.xlu1 %v1887_v8, %s1998_s22  ;;  %v1907_v43 = vpack.i.bf16 %v790_v41, %v788_v40  ;;  %v1902_v44 = vpack.i.bf16 %v785_v37, %v783_v42  ;;  %vm1202_vm1 = vcmask 1047559  }
  0x58   : > { %1883 = vrot.lane.b32.xlu0 %v1882_v9, %s1998_s22 }
  0x5b   : > { %1898 = vrot.lane.b32.xlu1 %v1897_v38, %s2000_s26 }
  0x5c   : > { %1893 = vrot.lane.b32.xlu0 %v1892_v21, %s2000_s26 }
  0x5f   : > { %1908 = vrot.lane.b32.xlu1 %v1907_v43, %s2001_s28 }
  0x60   : > { %1903 = vrot.lane.b32.xlu0 %v1902_v44, %s2001_s28 }
  0x95   : > { %v1764_v45 = vpop.permute.xlu1 %1763 }
  0x96   : > { %v1754_v31 = vpop.permute.xlu0 %1753  ;;  %v1766_v52 = vunpack.i.h.bf16 %v1764_v45  ;;  %v1765_v53 = vunpack.i.l.bf16 %v1764_v45 }
  0x97   : > { %v1756_v46 = vunpack.i.h.bf16 %v1754_v31  ;;  %v1755_v47 = vunpack.i.l.bf16 %v1754_v31 }
  0x99   : > { %v1769_v36 = vpop.permute.xlu1 %1768  ;;  %v841_v55 = vsel %vm839_vm5, %v2132_v23, %v1756_v46  ;;  %v840_v57 = vsel %vm839_vm5, %v2135_v24, %v1755_v47 }
  0x9a   : > { %v1759_v48 = vpop.permute.xlu0 %1758  ;;  %v1771_v58 = vunpack.i.h.bf16 %v1769_v36  ;;  %v1770_v59 = vunpack.i.l.bf16 %v1769_v36  ;;  %v857_v23 = vsel %vm856_vm6, %v840_v57, %v1765_v53  ;;  %v858_v24 = vsel %vm856_vm6, %v841_v55, %v1766_v52 }
  0x9b   : > { %v1761_v49 = vunpack.i.h.bf16 %v1759_v48  ;;  %v1760_v50 = vunpack.i.l.bf16 %v1759_v48 }
  0x9d   : > { %v1779_v54 = vpop.permute.xlu1 %1778  ;;  %v843_v61 = vsel %vm839_vm5, %v2141_v26, %v1761_v49  ;;  %v842_v62 = vsel %vm839_vm5, %v2150_v33, %v1760_v50 }
  0x9e   : > { %v1774_v60 = vpop.permute.xlu0 %1773  ;;  %v1781_v63 = vunpack.i.h.bf16 %v1779_v54  ;;  %v1780_v0 = vunpack.i.l.bf16 %v1779_v54  ;;  %v859_v4 = vsel %vm856_vm6, %v842_v62, %v1770_v59  ;;  %v860_v5 = vsel %vm856_vm6, %v843_v61, %v1771_v58 }
  0x9f   : > { %v1776_v1 = vunpack.i.h.bf16 %v1774_v60  ;;  %v1775_v2 = vunpack.i.l.bf16 %v1774_v60 }
  0xa0   : > { %v876_v33 = vsel %vm873_vm7, %v859_v4, %v1780_v0  ;;  %v877_v8 = vsel %vm873_vm7, %v860_v5, %v1781_v63 }
  0xa1   : > { %v1789_v3 = vpop.permute.xlu1 %1788  ;;  %v874_v15 = vsel %vm873_vm7, %v857_v23, %v1775_v2  ;;  %v875_v16 = vsel %vm873_vm7, %v858_v24, %v1776_v1 }
  0xa2   : > { %v1791_v6 = vunpack.i.h.bf16 %v1789_v3  ;;  %v1790_v26 = vunpack.i.l.bf16 %v1789_v3  ;;  %v1784_v7 = vpop.permute.xlu0 %1783 }
  0xa3   : > { %v1786_v9 = vunpack.i.h.bf16 %v1784_v7  ;;  %v1785_v10 = vunpack.i.l.bf16 %v1784_v7 }
  0xa4   : > { %v893_v13 = vsel %vm890_vm8, %v876_v33, %v1790_v26  ;;  %v894_v14 = vsel %vm890_vm8, %v877_v8, %v1791_v6 }
  0xa5   : > { %v908_v17 = vpack.c.bf16 %v894_v14, %v893_v13  ;;  %v1799_v18 = vpop.permute.xlu1 %1798  ;;  %v891_v25 = vsel %vm890_vm8, %v874_v15, %v1785_v10  ;;  %v892_v27 = vsel %vm890_vm8, %v875_v16, %v1786_v9 }
  0xa6   : > { %v1794_v28 = vpop.permute.xlu0 %1793  ;;  %v907_v30 = vpack.c.bf16 %v892_v27, %v891_v25  ;;  %v1801_v40 = vunpack.i.h.bf16 %v1799_v18  ;;  %v1800_v41 = vunpack.i.l.bf16 %v1799_v18 }
  0xa7   : > { %v1796_v42 = vunpack.i.h.bf16 %v1794_v28  ;;  %v1795_v37 = vunpack.i.l.bf16 %v1794_v28 }
  0xa8   : > { %1660 = vmatprep.mubr.msk.bf16.mxu0 %vm955_vm9, %v907_v30  ;;  %v847_v49 = vsel %vm839_vm5, %v2194_v11, %v1801_v40  ;;  %v846_v50 = vsel %vm839_vm5, %v2198_v12, %v1800_v41 }
  0xa9   : > { %1661 = vmatmul.mubr.msk.bf16.vlgmr.msra.gmra.mrb[0].mxu0 %vm955_vm9, %v908_v17  ;;  %v1809_v38 = vpop.permute.xlu1 %1808  ;;  %v845_v54 = vsel %vm839_vm5, %v2210_v19, %v1796_v42  ;;  %v844_v55 = vsel %vm839_vm5, %v2215_v20, %v1795_v37 }
  0xaa   : > { %v1804_v21 = vpop.permute.xlu0 %1803  ;;  %v1811_v43 = vunpack.i.h.bf16 %v1809_v38  ;;  %v1810_v44 = vunpack.i.l.bf16 %v1809_v38 }
  0xab   : > { %v1806_v31 = vunpack.i.h.bf16 %v1804_v21  ;;  %v1805_v36 = vunpack.i.l.bf16 %v1804_v21 }
  0xac   : > { %v863_v57 = vsel %vm856_vm6, %v846_v50, %v1810_v44  ;;  %v864_v58 = vsel %vm856_vm6, %v847_v49, %v1811_v43 }
  0xad   : > { %v1819_v45 = vpop.permute.xlu1 %1818  ;;  %v861_v60 = vsel %vm856_vm6, %v844_v55, %v1805_v36  ;;  %v862_v11 = vsel %vm856_vm6, %v845_v54, %v1806_v31 }
  0xae   : > { %v1814_v46 = vpop.permute.xlu0 %1813  ;;  %v1821_v47 = vunpack.i.h.bf16 %v1819_v45  ;;  %v1820_v48 = vunpack.i.l.bf16 %v1819_v45 }
  0xaf   : > { %v1816_v52 = vunpack.i.h.bf16 %v1814_v46  ;;  %v1815_v53 = vunpack.i.l.bf16 %v1814_v46 }
  0xb0   : > { %v880_v63 = vsel %vm873_vm7, %v863_v57, %v1820_v48  ;;  %v881_v0 = vsel %vm873_vm7, %v864_v58, %v1821_v47 }
  0xb1   : > { %v1829_v59 = vpop.permute.xlu1 %1828  ;;  %v878_v20 = vsel %vm873_vm7, %v861_v60, %v1815_v53  ;;  %v879_v2 = vsel %vm873_vm7, %v862_v11, %v1816_v52 }
  0xb2   : > { %v1831_v61 = vunpack.i.h.bf16 %v1829_v59  ;;  %v1830_v62 = vunpack.i.l.bf16 %v1829_v59  ;;  %v1824_v12 = vpop.permute.xlu0 %1823 }
  0xb3   : > { %v1826_v19 = vunpack.i.h.bf16 %v1824_v12  ;;  %v1825_v1 = vunpack.i.l.bf16 %v1824_v12 }
  0xb4   : > { %v897_v3 = vsel %vm890_vm8, %v880_v63, %v1830_v62  ;;  %v898_v23 = vsel %vm890_vm8, %v881_v0, %v1831_v61 }
  0xb5   : > { %v910_v24 = vpack.c.bf16 %v898_v23, %v897_v3  ;;  %v895_v4 = vsel %vm890_vm8, %v878_v20, %v1825_v1  ;;  %v896_v5 = vsel %vm890_vm8, %v879_v2, %v1826_v19  ;;  %v1839_v6 = vpop.permute.xlu1 %1838 }
  0xb6   : > { %v909_v26 = vpack.c.bf16 %v896_v5, %v895_v4  ;;  %v1834_v7 = vpop.permute.xlu0 %1833  ;;  %v1841_v9 = vunpack.i.h.bf16 %v1839_v6  ;;  %v1840_v10 = vunpack.i.l.bf16 %v1839_v6 }
  0xb7   : > { %v1836_v13 = vunpack.i.h.bf16 %v1834_v7  ;;  %v1835_v14 = vunpack.i.l.bf16 %v1834_v7 }
  0xb8   : > { %1664 = vmatprep.mubr.msk.bf16.mxu0 %vm955_vm9, %v909_v26  ;;  %v851_v38 = vsel %vm839_vm5, %v2262_v32, %v1841_v9  ;;  %v850_v21 = vsel %vm839_vm5, %v2265_v34, %v1840_v10 }
  0xb9   : > { %1665 = vmatmul.mubr.msk.bf16.gmra.mrb[4].mxu0 %vm955_vm9, %v910_v24  ;;  %v1849_v33 = vpop.permute.xlu1 %1848  ;;  %v849_v42 = vsel %vm839_vm5, %v2272_v22, %v1836_v13  ;;  %v848_v37 = vsel %vm839_vm5, %v2275_v39, %v1835_v14 }
  0xba   : > { %v1844_v8 = vpop.permute.xlu0 %1843  ;;  %v1851_v15 = vunpack.i.h.bf16 %v1849_v33  ;;  %v1850_v16 = vunpack.i.l.bf16 %v1849_v33 }
  0xbb   : > { %v1846_v18 = vunpack.i.h.bf16 %v1844_v8  ;;  %v1845_v25 = vunpack.i.l.bf16 %v1844_v8 }
  0xbc   : > { %v867_v43 = vsel %vm856_vm6, %v850_v21, %v1850_v16  ;;  %v868_v44 = vsel %vm856_vm6, %v851_v38, %v1851_v15 }
  0xbd   : > { %v1859_v17 = vpop.permute.xlu1 %1858  ;;  %v865_v31 = vsel %vm856_vm6, %v848_v37, %v1845_v25  ;;  %v866_v32 = vsel %vm856_vm6, %v849_v42, %v1846_v18  ;;  %v1917_v42 = vld [vmem:[%s2616_s4] sm:$0xff]   ;;  %v2002_v37 = vmov 0.0  }
  0xbe   : > { %v1854_v27 = vpop.permute.xlu0 %1853  ;;  %v1861_v28 = vunpack.i.h.bf16 %v1859_v17  ;;  %v1860_v30 = vunpack.i.l.bf16 %v1859_v17  ;;  %1676 = vmatprep.subr.bf16.mxu1 %v2002_v37  ;;  %1686 = vmatprep.mubr.msk.bf16.mxu1 %vm2003_vm15, %v2002_v37 }
  0xbf   : > { %v1856_v40 = vunpack.i.h.bf16 %v1854_v27  ;;  %v1855_v41 = vunpack.i.l.bf16 %v1854_v27  ;;  %1677 = vmatpush3.bf16.msra.mxu1 %v1917_v42 }
  0xc0   : > { %v884_v47 = vsel %vm873_vm7, %v867_v43, %v1860_v30  ;;  %v885_v48 = vsel %vm873_vm7, %v868_v44, %v1861_v28  ;;  %v1918_v43 = vld [vmem:[%s2616_s4 + $0x8] sm:$0xff]   ;;  %1678 = vmatprep.subr.bf16.mxu1 %v2002_v37  ;;  %v1919_v44 = vld [vmem:[%s2616_s4 + $0x10] sm:$0xff]  }
  0xc1   : > { %v1869_v45 = vpop.permute.xlu1 %1868  ;;  %v882_v39 = vsel %vm873_vm7, %v865_v31, %v1855_v41  ;;  %v883_v50 = vsel %vm873_vm7, %v866_v32, %v1856_v40  ;;  %v2489_v31 = vld [vmem:[%s2615_s3] ss:$0 sm:$0xff] }
  0xc2   : > { %v1871_v36 = vunpack.i.h.bf16 %v1869_v45  ;;  %v1870_v46 = vunpack.i.l.bf16 %v1869_v45  ;;  %v1864_v34 = vpop.permute.xlu0 %1863  ;;  %v1920_v45 = vld [vmem:[%s2616_s4 + $0x18] sm:$0xff]  }
  0xc3   : > { %v1866_v22 = vunpack.i.h.bf16 %v1864_v34  ;;  %v1865_v49 = vunpack.i.l.bf16 %v1864_v34  ;;  %1679 = vmatpush3.bf16.msra.mxu1 %v1918_v43 }
  0xc4   : > { %v901_v52 = vsel %vm890_vm8, %v884_v47, %v1870_v46  ;;  %v902_v53 = vsel %vm890_vm8, %v885_v48, %v1871_v36  ;;  %1680 = vmatprep.subr.bf16.mxu1 %v2002_v37 }
  0xc5   : > { %v912_v54 = vpack.c.bf16 %v902_v53, %v901_v52  ;;  %v899_v55 = vsel %vm890_vm8, %v882_v39, %v1865_v49  ;;  %v900_v57 = vsel %vm890_vm8, %v883_v50, %v1866_v22  ;;  %v1879_v58 = vpop.permute.xlu1 %1878 }
  0xc6   : > { %v911_v59 = vpack.c.bf16 %v900_v57, %v899_v55  ;;  %v1874_v60 = vpop.permute.xlu0 %1873  ;;  %v1881_v62 = vunpack.i.h.bf16 %v1879_v58  ;;  %v1880_v12 = vunpack.i.l.bf16 %v1879_v58 }
  0xc7   : > { %v1876_v63 = vunpack.i.h.bf16 %v1874_v60  ;;  %v1875_v0 = vunpack.i.l.bf16 %v1874_v60  ;;  %1681 = vmatpush3.bf16.msra.mxu1 %v1919_v44 }
  0xc8   : > { %1668 = vmatprep.mubr.msk.bf16.mxu0 %vm955_vm9, %v911_v59  ;;  %v855_v5 = vsel %vm839_vm5, %v2314_v29, %v1881_v62  ;;  %v854_v6 = vsel %vm839_vm5, %v2320_v35, %v1880_v12  ;;  %1682 = vmatprep.subr.bf16.mxu1 %v2002_v37 }
  0xc9   : > { %1669 = vmatmul.mubr.msk.bf16.gmra.mrb[8].mxu0 %vm955_vm9, %v912_v54  ;;  %v1889_v11 = vpop.permute.xlu1 %1888  ;;  %v853_v33 = vsel %vm839_vm5, %v2344_v56, %v1876_v63  ;;  %v852_v8 = vsel %vm839_vm5, %v2337_v51, %v1875_v0 }
  0xca   : > { %v1884_v61 = vpop.permute.xlu0 %1883  ;;  %v1891_v19 = vunpack.i.h.bf16 %v1889_v11  ;;  %v1890_v1 = vunpack.i.l.bf16 %v1889_v11 }
  0xcb   : > { %v1886_v2 = vunpack.i.h.bf16 %v1884_v61  ;;  %v1885_v3 = vunpack.i.l.bf16 %v1884_v61  ;;  %1683 = vmatpush3.bf16.msra.mxu1 %v1920_v45 }
  0xcc   : > { %v871_v9 = vsel %vm856_vm6, %v854_v6, %v1890_v1  ;;  %v872_v10 = vsel %vm856_vm6, %v855_v5, %v1891_v19  ;;  %1684 = vmatprep.subr.bf16.mxu1 %v2002_v37 }
  0xcd   : > { %v1899_v20 = vpop.permute.xlu1 %1898  ;;  %v869_v14 = vsel %vm856_vm6, %v852_v8, %v1885_v3  ;;  %v870_v29 = vsel %vm856_vm6, %v853_v33, %v1886_v2 }
  0xce   : > { %v1894_v23 = vpop.permute.xlu0 %1893  ;;  %v1901_v24 = vunpack.i.h.bf16 %v1899_v20  ;;  %v1900_v4 = vunpack.i.l.bf16 %v1899_v20 }
  0xcf   : > { %v1896_v26 = vunpack.i.h.bf16 %v1894_v23  ;;  %v1895_v7 = vunpack.i.l.bf16 %v1894_v23 }
  0xd0   : > { %v888_v17 = vsel %vm873_vm7, %v871_v9, %v1900_v4  ;;  %v889_v18 = vsel %vm873_vm7, %v872_v10, %v1901_v24 }
  0xd1   : > { %v1909_v13 = vpop.permute.xlu1 %1908  ;;  %v886_v51 = vsel %vm873_vm7, %v869_v14, %v1895_v7  ;;  %v887_v27 = vsel %vm873_vm7, %v870_v29, %v1896_v26 }
  0xd2   : > { %v1911_v15 = vunpack.i.h.bf16 %v1909_v13  ;;  %v1910_v16 = vunpack.i.l.bf16 %v1909_v13  ;;  %v1904_v35 = vpop.permute.xlu0 %1903 }
  0xd3   : > { %v1906_v56 = vunpack.i.h.bf16 %v1904_v35  ;;  %v1905_v25 = vunpack.i.l.bf16 %v1904_v35 }
  0xd4   : > { %v905_v28 = vsel %vm890_vm8, %v888_v17, %v1910_v16  ;;  %v906_v30 = vsel %vm890_vm8, %v889_v18, %v1911_v15 }
  0xd5   : > { %v914_v38 = vpack.c.bf16 %v906_v30, %v905_v28  ;;  %v903_v21 = vsel %vm890_vm8, %v886_v51, %v1905_v25  ;;  %v904_v40 = vsel %vm890_vm8, %v887_v27, %v1906_v56 }
  0xd6   : > { %v913_v41 = vpack.c.bf16 %v904_v40, %v903_v21 }
  0xd8   : > { %1672 = vmatprep.mubr.msk.bf16.mxu0 %vm955_vm9, %v913_v41 }
  0xd9   : > { %1673 = vmatmul.mubr.msk.bf16.gmra.mrb[12].mxu0 %vm955_vm9, %v914_v38 }
 0x17c   : > { %v1662_v32 = vpop.f32.mrb[0].mxu0 }
 0x17d   : > { %v1086_v36 = vadd.f32 %v1662_v32, %v2489_v31  ;;  %v1014_v46 = vpop.f32.mrb[1].mxu0 }
 0x17e   : > { %v1084_v34 = vadd.f32 %v2489_v31, %v1014_v46  ;;  %v1663_v47 = vpop.f32.mrb[2].mxu0 }
 0x17f   : > { %v1087_v48 = vadd.f32 %v1663_v47, %v2489_v31  ;;  %v1017_v22 = vpop.f32.mrb[3].mxu0  ;;  %v1109_v39 = vsel %vm856_vm6, %v1086_v36, -inf }
 0x180   : > { %v1085_v49 = vadd.f32 %v2489_v31, %v1017_v22  ;;  %v1100_v52 = vsel %vm856_vm6, %v1084_v34, -inf }
 0x181   : > { %v1110_v50 = vsel %vm856_vm6, %v1087_v48, -inf }
 0x182   : > { %v1111_v53 = vmax.f32 %v1109_v39, %v1110_v50  ;;  %v1101_v54 = vsel %vm856_vm6, %v1085_v49, -inf }
 0x183   : > { %v1102_v55 = vmax.f32 %v1100_v52, %v1101_v54 }
 0x184   : > { %v1112_v57 = vrot.slane %v1111_v53, 4 }
 0x185   : > { %v1103_v58 = vrot.slane %v1102_v55, 4 }
 0x186   : > { %v1113_v59 = vmax.f32 %v1111_v53, %v1112_v57 }
 0x187   : > { %v1104_v60 = vmax.f32 %v1102_v55, %v1103_v58 }
 0x188   : > { %v1114_v11 = vrot.slane %v1113_v59, 2 }
 0x189   : > { %v1105_v61 = vrot.slane %v1104_v60, 2 }
 0x18a   : > { %v1115_v62 = vmax.f32 %v1113_v59, %v1114_v11 }
 0x18b   : > { %v1106_v12 = vmax.f32 %v1104_v60, %v1105_v61 }
 0x18c   : > { %v1116_v63 = vrot.slane %v1115_v62, 1  ;;  %v1666_v0 = vpop.f32.mrb[4].mxu0 }
 0x18d   : > { %v1107_v19 = vrot.slane %v1106_v12, 1  ;;  %v1090_v1 = vadd.f32 %v1666_v0, %v2489_v31  ;;  %v1030_v20 = vpop.f32.mrb[5].mxu0 }
 0x18e   : > { %v1117_v2 = vmax.f32 %v1115_v62, %v1116_v63  ;;  %v1088_v3 = vadd.f32 %v2489_v31, %v1030_v20  ;;  %v1667_v23 = vpop.f32.mrb[6].mxu0 }
 0x18f   : > { %v1108_v24 = vmax.f32 %v1106_v12, %v1107_v19  ;;  %v1091_v4 = vadd.f32 %v1667_v23, %v2489_v31  ;;  %v1033_v5 = vpop.f32.mrb[7].mxu0  ;;  %v1127_v33 = vsel %vm856_vm6, %v1090_v1, -inf }
 0x190   : > { %v1173_v6 = vmax.f32 %v1117_v2, 0.0  ;;  %v1089_v26 = vadd.f32 %v2489_v31, %v1033_v5  ;;  %v1118_v9 = vsel %vm856_vm6, %v1088_v3, -inf }
 0x191   : > { %v1172_v7 = vmax.f32 %v1108_v24, 0.0  ;;  %v1128_v8 = vsel %vm856_vm6, %v1091_v4, -inf }
 0x192   : > { %v1129_v10 = vmax.f32 %v1127_v33, %v1128_v8  ;;  %v1119_v13 = vsel %vm856_vm6, %v1089_v26, -inf }
 0x193   : > { %v1191_v14 = vsel %vm1190_vm10, %v1173_v6, %v1172_v7  ;;  %v1120_v29 = vmax.f32 %v1118_v9, %v1119_v13 }
 0x194   : > { %v1130_v15 = vrot.slane %v1129_v10, 4 }
 0x195   : > { %v1121_v16 = vrot.slane %v1120_v29, 4 }
 0x196   : > { %v1131_v35 = vmax.f32 %v1129_v10, %v1130_v15 }
 0x197   : > { %v1122_v17 = vmax.f32 %v1120_v29, %v1121_v16 }
 0x198   : > { %v1132_v18 = vrot.slane %v1131_v35, 2 }
 0x199   : > { %v1123_v56 = vrot.slane %v1122_v17, 2 }
 0x19a   : > { %v1133_v25 = vmax.f32 %v1131_v35, %v1132_v18 }
 0x19b   : > { %v1124_v51 = vmax.f32 %v1122_v17, %v1123_v56 }
 0x19c   : > { %v1134_v27 = vrot.slane %v1133_v25, 1  ;;  %v1670_v28 = vpop.f32.mrb[8].mxu0 }
 0x19d   : > { %v1125_v30 = vrot.slane %v1124_v51, 1  ;;  %v1094_v38 = vadd.f32 %v1670_v28, %v2489_v31  ;;  %v1046_v21 = vpop.f32.mrb[9].mxu0 }
 0x19e   : > { %v1135_v40 = vmax.f32 %v1133_v25, %v1134_v27  ;;  %v1092_v41 = vadd.f32 %v2489_v31, %v1046_v21  ;;  %v1671_v42 = vpop.f32.mrb[10].mxu0 }
 0x19f   : > { %v1126_v43 = vmax.f32 %v1124_v51, %v1125_v30  ;;  %v1095_v44 = vadd.f32 %v1671_v42, %v2489_v31  ;;  %v1049_v45 = vpop.f32.mrb[11].mxu0  ;;  %v1145_v46 = vsel %vm856_vm6, %v1094_v38, -inf }
 0x1a0   : > { %v1093_v32 = vadd.f32 %v2489_v31, %v1049_v45  ;;  %v1175_v47 = vmax.f32 %v1135_v40, 0.0  ;;  %v1136_v48 = vsel %vm856_vm6, %v1092_v41, -inf  ;;  %v1180_v41 = vld [vmem:[%s345_s21] sm:$0xf]  ;;  %s1938_s21 = sshll.u32 %s2005_s13, 4  ;;  %s1939_s21 = int_to_ptr.vmem [resolvable:$false] %s1938_s21 }
 0x1a1   : > { %v1174_v36 = vmax.f32 %v1126_v43, 0.0  ;;  %v1146_v34 = vsel %vm856_vm6, %v1095_v44, -inf  ;;  %v1181_v42 = vunpack.c.l.bf16 %v1180_v41  ;;  %v1922_v45 = vld [vmem:[%s2617_s5] sm:$0xff]   ;;  %s1940_s22 = scalar_lea.vmem %s1939_s21, 256 }
 0x1a2   : > { %v1147_v22 = vmax.f32 %v1145_v46, %v1146_v34  ;;  %v1137_v49 = vsel %vm856_vm6, %v1093_v32, -inf }
 0x1a3   : > { %v1138_v39 = vmax.f32 %v1136_v48, %v1137_v49  ;;  %v1193_v50 = vsel %vm1192_vm11, %v1174_v36, %v1191_v14  ;;  %v1923_v36 = vld [vmem:[%s2617_s5 + $0x8] sm:$0xff]   ;;  %v1924_v49 = vld [vmem:[%s2619_s7] sm:$0xff]  }
 0x1a4   : > { %v1148_v52 = vrot.slane %v1147_v22, 4  ;;  %v1195_v53 = vsel %vm1194_vm12, %v1175_v47, %v1193_v50  ;;  %v1571_v50 = vld [vmem:[%s2618_s6] ss:$0 sm:$0xff] }
 0x1a5   : > { %v1139_v54 = vrot.slane %v1138_v39, 4 }
 0x1a6   : > { %v1149_v55 = vmax.f32 %v1147_v22, %v1148_v52 }
 0x1a7   : > { %v1140_v57 = vmax.f32 %v1138_v39, %v1139_v54  ;;  %v1925_v39 = vld [vmem:[%s2619_s7 + $0x8] sm:$0xff]  }
 0x1a8   : > { %v1150_v58 = vrot.slane %v1149_v55, 2 }
 0x1a9   : > { %v1141_v59 = vrot.slane %v1140_v57, 2 }
 0x1aa   : > { %v1151_v60 = vmax.f32 %v1149_v55, %v1150_v58 }
 0x1ab   : > { %v1142_v11 = vmax.f32 %v1140_v57, %v1141_v59 }
 0x1ac   : > { %v1152_v61 = vrot.slane %v1151_v60, 1  ;;  %v1674_v62 = vpop.f32.mrb[12].mxu0 }
 0x1ad   : > { %v1143_v12 = vrot.slane %v1142_v11, 1  ;;  %v1098_v63 = vadd.f32 %v1674_v62, %v2489_v31  ;;  %v1062_v0 = vpop.f32.mrb[13].mxu0 }
 0x1ae   : > { %v1153_v19 = vmax.f32 %v1151_v60, %v1152_v61  ;;  %v1096_v1 = vadd.f32 %v2489_v31, %v1062_v0  ;;  %v1675_v20 = vpop.f32.mrb[14].mxu0 }
 0x1af   : > { %v1144_v2 = vmax.f32 %v1142_v11, %v1143_v12  ;;  %v1099_v3 = vadd.f32 %v1675_v20, %v2489_v31  ;;  %v1065_v23 = vpop.f32.mrb[15].mxu0  ;;  %v1163_v5 = vsel %vm856_vm6, %v1098_v63, -inf }
 0x1b0   : > { %v1097_v24 = vadd.f32 %v2489_v31, %v1065_v23  ;;  %v1177_v26 = vmax.f32 %v1153_v19, 0.0  ;;  %v1154_v7 = vsel %vm856_vm6, %v1096_v1, -inf  ;;  %v1921_v31 = vld [vmem:[%s2616_s4 + $0x20] sm:$0xff]  }
 0x1b1   : > { %v1176_v4 = vmax.f32 %v1144_v2, 0.0  ;;  %v1164_v6 = vsel %vm856_vm6, %v1099_v3, -inf  ;;  %1685 = vmatpush3.bf16.msra.mxu1 %v1921_v31  ;;  %v1576_v1 = vld [vmem:[%s2620_s8] ss:$0 sm:$0xff] }
 0x1b2   : > { %v1165_v33 = vmax.f32 %v1163_v5, %v1164_v6  ;;  %v1155_v8 = vsel %vm856_vm6, %v1097_v24, -inf  ;;  %1690 = vmatprep.subr.bf16.mxu1 %v2002_v37 }
 0x1b3   : > { %v1156_v9 = vmax.f32 %v1154_v7, %v1155_v8  ;;  %v1197_v10 = vsel %vm1196_vm13, %v1176_v4, %v1195_v53 }
 0x1b4   : > { %v1166_v13 = vrot.slane %v1165_v33, 4  ;;  %v1199_v14 = vsel %vm1198_vm14, %v1177_v26, %v1197_v10 }
 0x1b5   : > { %v1157_v29 = vrot.slane %v1156_v9, 4 }
 0x1b6   : > { %v1167_v15 = vmax.f32 %v1165_v33, %v1166_v13 }
 0x1b7   : > { %v1158_v16 = vmax.f32 %v1156_v9, %v1157_v29 }
 0x1b8   : > { %v1168_v35 = vrot.slane %v1167_v15, 2 }
 0x1b9   : > { %v1159_v17 = vrot.slane %v1158_v16, 2 }
 0x1ba   : > { %v1169_v18 = vmax.f32 %v1167_v15, %v1168_v35 }
 0x1bb   : > { %v1160_v56 = vmax.f32 %v1158_v16, %v1159_v17 }
 0x1bc   : > { %v1170_v25 = vrot.slane %v1169_v18, 1 }
 0x1bd   : > { %v1161_v51 = vrot.slane %v1160_v56, 1 }
 0x1be   : > { %v1171_v27 = vmax.f32 %v1169_v18, %v1170_v25 }
 0x1bf   : > { %v1162_v28 = vmax.f32 %v1160_v56, %v1161_v51 }
 0x1c0   : > { %v1179_v38 = vmax.f32 %v1171_v27, 0.0 }
 0x1c1   : > { %v1178_v30 = vmax.f32 %v1162_v28, 0.0 }
 0x1c3   : > { %v1201_v21 = vsel %vm1200_vm0, %v1178_v30, %v1199_v14 }
 0x1c4   : > { %v1203_v40 = vsel %vm1202_vm1, %v1179_v38, %v1201_v21 }
 0x1c5   : > { %1204 = vrot.lane.b32.xlu0 %v1203_v40, %s2000_s26  ;;  %s1546_s26 = sshll.u32 %s339_s23, 3 }
 0x1c6   : > { %s341_s25 = scalar_lea.vmem [#allocation2], %s1546_s26 }
 0x1c7   : > { %s1471_s28 = sshll.u32 %s341_s25, 4  ;;  %s2571_s28 = int_to_ptr.vmem [resolvable:$true] %s1471_s28 }
 0x1c8   : > { %p1941_p1 = scmp.lt.s32.totalorder %s2571_s28, %s1939_s21 }
 0x237   : > { %v1205_v43 = vpop.permute.xlu0 %1204 }
 0x238   : > { %v1207_v44 = vsel %vm873_vm7, %v1181_v42, %v1205_v43 }
 0x239   : > { %v1208_v32 = vpack.c.bf16 %v1207_v44, %v1207_v44 }
 0x23b   : > { %1687 = vmatmul.mubr.msk.bf16.vlgmr.msra.gmra.mrb[0].mxu1 %vm955_vm9, %v1208_v32 }
 0x23c   : > { %1691 = vmatpush3.bf16.msra.mxu1 %v1922_v45  ;;  %1694 = vmatprep.mubr.msk.bf16.mxu1 %vm2003_vm15, %v2002_v37 }
 0x23d   : > { %1692 = vmatprep.subr.bf16.mxu1 %v2002_v37 }
 0x240   : > { %1693 = vmatpush3.bf16.msra.mxu1 %v1923_v36 }
 0x241   : > { %1698 = vmatprep.subr.bf16.mxu1 %v2002_v37 }
 0x30e   : > { %v1286_v46 = vpop.f32.mrb[0].mxu1 }
 0x30f   : > { %v1292_v34 = vpack.c.bf16 %v1286_v46, %v1286_v46  ;;  %v1688_v47 = vpop.f32.mrb[1].mxu1 }
 0x310   : > { %v1289_v48 = vpop.f32.mrb[2].mxu1 }
 0x311   : > { %v1689_v22 = vpop.f32.mrb[3].mxu1  ;;  %1695 = vmatmul.mubr.msk.bf16.vlgmr.msra.gmra.mrb[4].mxu1 %vm856_vm6, %v1292_v34 }
 0x312   : > { %1702 = vmatprep.mubr.msk.bf16.mxu1 %vm2003_vm15, %v2002_v37  ;;  %1699 = vmatpush3.bf16.msra.mxu1 %v1924_v49 }
 0x313   : > { %1700 = vmatprep.subr.bf16.mxu1 %v2002_v37 }
 0x316   : > { %1701 = vmatpush3.bf16.msra.mxu1 %v1925_v39 }
 0x3e4   : > { %v1353_v52 = vpop.f32.mrb[4].mxu1 }
 0x3e5   : > { %v1354_v53 = vadd.f32 %v1571_v50, %v1353_v52  ;;  %v1696_v54 = vpop.f32.mrb[5].mxu1 }
 0x3e6   : > { %v1356_v55 = vpop.f32.mrb[6].mxu1 }
 0x3e7   : > { %v1575_v57 = vmul.f32 -1.442695, %v1354_v53  ;;  %v1365_v58 = vmax.f32 %v1354_v53, 0.0  ;;  %v1697_v59 = vpop.f32.mrb[7].mxu1 }
 0x3e9   : > { %1926 = vpow2.f32 %v1575_v57  ;;  %1367 = vrot.lane.b32.xlu1 %v1365_v58, %s2004_s17 }
 0x3f3   : > { %v1927_v37 = vpop.eup %1926 }
 0x3f4   : > { %v1362_v60 = vadd.f32 1.0, %v1927_v37 }
 0x3f6   : > { %1928 = vrcp.f32 %v1362_v60 }
 0x400   : > { %v1929_v11 = vpop.eup %1928 }
 0x401   : > { %v1371_v61 = vsub.f32 1.0, %v1929_v11 }
 0x403   : > { %v1372_v62 = vmul.f32 %v1371_v61, %v1286_v46 }
 0x45b   : > { %v1368_v12 = vpop.permute.xlu1 %1367 }
 0x45c   : > { %v1370_v63 = vmul.f32 %v1929_v11, %v1368_v12 }
 0x45e   : > { %v1373_v0 = vadd.f32 %v1372_v62, %v1370_v63 }
 0x460   : > { %v1374_v19 = vpack.c.bf16 %v1373_v0, %v1373_v0 }
 0x462   : > { %1703 = vmatmul.mubr.msk.bf16.vlgmr.msra.gmra.mrb[8].mxu1 %vm856_vm6, %v1374_v19 }
 0x535   : > { %v1435_v20 = vpop.f32.mrb[8].mxu1 }
 0x536   : > { %v1436_v2 = vadd.f32 %v1576_v1, %v1435_v20  ;;  %v1704_v3 = vpop.f32.mrb[9].mxu1 }
 0x537   : > { %v1438_v23 = vpop.f32.mrb[10].mxu1 }
 0x538   : > { %v1447_v24 = vmax.f32 %v1436_v2, 0.0  ;;  %v1705_v4 = vpop.f32.mrb[11].mxu1  ;;  %v1580_v5 = vmul.f32 -1.442695, %v1436_v2 }
 0x53a   : > { %1449 = vrot.lane.b32.xlu0 %v1447_v24, %s2004_s17  ;;  %1930 = vpow2.f32 %v1580_v5  ;;  %s1934_s17 = scalar_lea.vmem %s2571_s28, 128 }
 0x53b   : > { %p1935_p12 = scmp.ne.s32.totalorder %s2571_s28, %s1934_s17  ;;  %p1942_p2 = scmp.lt.s32.totalorder %s1940_s22, %s1934_s17 }
 0x53d   : > { %p1936_p13 = pnand %p1935_p12, %p2094_p5  ;;  %p1943_p3 = por %p1942_p2, %p1941_p1 }
 0x53f   : > { %p1937_p0 = pneg %p1936_p13 }
 0x541   : > { %p1944_p4 = pnand %p1943_p3, %p1937_p0 }
 0x544   : > { %v1931_v6 = vpop.eup %1930 }
 0x545   : > { %v1444_v26 = vadd.f32 1.0, %v1931_v6 }
 0x547   : > { %1932 = vrcp.f32 %v1444_v26 }
 0x551   : > { %v1933_v7 = vpop.eup %1932 }
 0x552   : > { %v1453_v33 = vsub.f32 1.0, %v1933_v7 }
 0x554   : > { %v1454_v10 = vmul.f32 %v1453_v33, %v1373_v0 }
 0x5ac   : > { %v1450_v8 = vpop.permute.xlu0 %1449 }
 0x5ad   : > { %v1452_v9 = vmul.f32 %v1933_v7, %v1450_v8 }
 0x5af   : > { %v1455_v13 = vadd.f32 %v1454_v10, %v1452_v9 }
 0x5b1   : > { %1456 = vst.msk [vmem:[%s341_s25] sm:$0xff] %vm856_vm6, %v1455_v13 }
 0x5b2   : > { %1947 = shalt.err (!%p1944_p4)
}
 0x5b3   : > { %s1948_s23 = scalar_lea.hbm %s2569_s14, 128  ;;  %s1952_s25 = scalar_lea.hbm %s2621_s9, 256 }
 0x5b4   : > { %p1949_p7 = scmp.ne.s32.totalorder %s2569_s14, %s1948_s23  ;;  %p1953_p10 = scmp.lt.u32.totalorder %s2569_s14, %s2621_s9 }
 0x5b5   : > { %p1954_p11 = scmp.lt.u32.totalorder %s1952_s25, %s1948_s23  ;;  %p1956_p13 = scmp.lt.u32.totalorder %s1948_s23, %s2569_s14 }
 0x5b6   : > { %p1950_p8 = pnand %p1949_p7, %p2094_p5 }
 0x5b7   : > { %p1955_p12 = por %p1954_p11, %p1953_p10 }
 0x5b8   : > { %p1951_p9 = pneg %p1950_p8 }
 0x5b9   : > { %p1957_p0 = por %p1956_p13, %p1955_p12 }
 0x5bb   : > { %p1958_p1 = pnand %p1957_p0, %p1951_p9 }
 0x5bd   : > { %1961 = shalt.err (!%p1958_p1)
}
 0x5be   : > { %1706 = dma.vmem_to_hbm [thread:$0]  (%p2094_p5), %s2571_s28, 128, %s2569_s14, %s1458_s16  }
 0x5bf PF: > { %p1712_p2 = scmp.ge.s32.totalorder %s1996_s12, 2  ;;  %s1483_s17 = sand.u32 1, %s1984_s30  }
 0x5c0   : > { %s1484_s13 = scalar_lea.sflag [#allocation3], %s1483_s17 }
 0x5c1   : > { %p1709_p3 = pnand %p1712_p2, %p2098_p6 }
 0x5c3   : > { %1979 = dma.done.wait (!%p1709_p3), %s1484_s13, 128  }
 0x5c4   : > { %1981 = vsyncadd (!%p1709_p3), %s1484_s13, 4294967168  ;;  %p19_p4 = scmp.ge.s32.totalorder %s2081_s15, 4   ;;  %s2624_s30 = smov %s1988_s10 }
 0x5c5   : > { %s2625_s10 = smov %s1992_s11  ;;  %s2626_s11 = smov %s2092_s18 }
 0x5c6   : > { %s2627_s12 = smov %s2081_s15  ;;  %21 = sbr.rel (!%p19_p4) target bundleno = 3 (0x3), region = 94 }
 0x5cd   :  { %1489 = vsyncpa [#allocation3], 1 }
 0x5ce   :  { %1491 = vsyncpa [#allocation3 + $0x1], 1 }

</bundles_post_ra>
